<compile_context>
chip_gen: v6e
topology: v6e:2x2x1
jax: 0.10.0
libtpu: 0.0.40
codegen_flags: <defaults>
</compile_context>

<pallas_src>
import functools
import math

import jax
import jax.numpy as jnp
from jax import lax
from jax.experimental import pallas as pl
from jax.experimental.pallas import tpu as pltpu


def _round_up(a, b):
    return (a + b - 1) // b * b


def mlm_head_kernel(x_ref, w1_ref, b1_ref, gamma_ref, beta_ref,
                    wdec_ref, bdec_ref, o_ref, hn_ref, *, eps):
    # x_ref:    (tm, H)  compute dtype (bf16)
    # w1_ref:   (H, H)   bf16
    # b1/gamma/beta: (1, H) f32
    # wdec_ref: (H, tn)  bf16
    # bdec_ref: (1, tn)  f32
    # o_ref:    (tm, tn) out dtype (bf16 by default)
    # hn_ref:   (tm, H)  bf16 scratch — persists across the vocab ("arbitrary") axis
    j = pl.program_id(1)

    @pl.when(j == 0)
    def _():
        # dense: x @ W1 + b1  (bf16 operands, f32 accumulation)
        h = jnp.dot(x_ref[...], w1_ref[...],
                    preferred_element_type=jnp.float32) + b1_ref[...]
        # exact GELU (torch.nn.GELU default): 0.5 * h * (1 + erf(h / sqrt(2)))
        h = 0.5 * h * (1.0 + lax.erf(h * (1.0 / math.sqrt(2.0))))
        # LayerNorm over last axis, f32 statistics
        mean = jnp.mean(h, axis=-1, keepdims=True)
        centered = h - mean
        var = jnp.mean(centered * centered, axis=-1, keepdims=True)
        hn = centered * lax.rsqrt(var + eps) * gamma_ref[...] + beta_ref[...]
        hn_ref[...] = hn.astype(hn_ref.dtype)   # single cast to bf16

    # decoder: hn @ Wdec[:, vocab tile] + bias  (bf16 operands, f32 accumulation)
    out = jnp.dot(hn_ref[...], wdec_ref[...],
                  preferred_element_type=jnp.float32) + bdec_ref[...]
    o_ref[...] = out.astype(o_ref.dtype)


def _device_defaults():
    """(default row tile, TensorCores per chip) tuned per TPU generation."""
    try:
        kind = jax.devices()[0].device_kind.lower()
    except Exception:
        kind = ""
    if "v6" in kind:                 # ~918 TF/s vs ~1.4 TB/s -> need ~650+ flops/byte
        return 1024, 1
    if "v5" in kind:                 # roofline knee ~240 flops/byte
        return 384, 1
    if "v7" in kind or "7x" in kind:  # 2 TCs per chip, 64 MiB VMEM per TC
        return 512, 2
    return 512, 2                    # conservative default


def _pick_vocab_tiles(V, tn_target):
    """Pick (tn, Vp): prefer a tn dividing round_up(V, 128) so no output slice copy."""
    vp128 = _round_up(V, 128)
    tn_target = max(128, min(_round_up(tn_target, 128), vp128))
    for lanes in range(vp128 // 128, 0, -1):
        tn = lanes * 128
        if tn <= tn_target and vp128 % tn == 0:
            if tn >= min(1024, vp128):    # keep DMA runs long
                return tn, vp128
            break
    # No good divisor: keep tn large and pad the vocab to a multiple of tn instead.
    return tn_target, _round_up(V, tn_target)


def _shrink_tm_for_vmem(tm, H, tn, c_item, o_item, budget_bytes):
    def working_set(t):
        return (2 * t * H * c_item          # activations (double-buffered)
                + H * H * c_item            # w1 (single-buffered, constant)
                + 2 * H * tn * c_item       # decoder weight tile (double-buffered)
                + 2 * t * tn * o_item       # logits tile (double-buffered)
                + t * H * c_item            # hn scratch
                + 8 * H * 4 + 4 * tn * 4)   # small bias/LN vectors
    while tm > 16 and working_set(tm) > budget_bytes:
        tm = max(16, _round_up(tm // 2, 16))
    return tm


def mlm_head(hidden_states, params, *, eps=1e-12, tm=None, tn=2048,
             compute_dtype=jnp.bfloat16, out_dtype=jnp.bfloat16):
    """hidden_states: [B, S, H] -> predictions (logits) [B, S, V]."""
    B, S, H = hidden_states.shape
    V = params["w_dec"].shape[1]
    M = B * S

    # --- tile sizing ---------------------------------------------------------
    if tm is None:
        tm, n_cores = _device_defaults()
    else:
        n_cores = 1
    tm = max(16, _round_up(tm, 16))        # bf16 sublane packing is (16, 128)
    tn, Vp = _pick_vocab_tiles(V, tn)
    tm = _shrink_tm_for_vmem(tm, H, tn,
                             jnp.dtype(compute_dtype).itemsize,
                             jnp.dtype(out_dtype).itemsize,
                             budget_bytes=40 * 1024 * 1024)
    tm = min(tm, _round_up(M, 16))
    if n_cores > 1 and M >= 16 * n_cores and _round_up(M, tm) // tm < n_cores:
        # Make sure every TensorCore gets at least one row tile (v7x megacore).
        tm = max(16, _round_up(-(-M // n_cores), 16))
    Mp = _round_up(M, tm)
    # TODO(synk): for H >~ 2048, K-tile the (H, H) dense matmul over a third grid
    # axis instead of holding the full w1 block resident in VMEM.

    # --- operand prep (casts are no-ops when prepare_params() already ran) ----
    def cast(a, dt):
        return a if a.dtype == dt else a.astype(dt)

    x = cast(hidden_states.reshape(M, H), compute_dtype)
    if Mp != M:
        x = jnp.pad(x, ((0, Mp - M), (0, 0)))
    w1 = cast(params["w1"], compute_dtype)
    b1 = cast(params["b1"], jnp.float32)
    gamma = cast(params["gamma"], jnp.float32)
    beta = cast(params["beta"], jnp.float32)
    wdec = cast(params["w_dec"], compute_dtype)
    bdec = cast(params["b_dec"], jnp.float32)
    if Vp != V:
        wdec = jnp.pad(wdec, ((0, 0), (0, Vp - V)))
        bdec = jnp.pad(bdec, ((0, 0), (0, Vp - V)))

    grid = (Mp // tm, Vp // tn)   # rows outer ("parallel"), vocab inner ("arbitrary")

    c_item = jnp.dtype(compute_dtype).itemsize
    cost = pl.CostEstimate(
        flops=2 * Mp * H * H + 2 * Mp * H * Vp,
        transcendentals=Mp * H,
        bytes_accessed=(Mp * H * c_item                      # activations in
                        + H * H * c_item                     # dense weight
                        + grid[0] * H * Vp * c_item          # decoder weight restream
                        + Mp * Vp * jnp.dtype(out_dtype).itemsize),  # logits out
    )

    kernel = functools.partial(mlm_head_kernel, eps=float(eps))

    def run(single_buffer_consts):
        if single_buffer_consts:
            def const_spec(shape):
                # Grid-invariant blocks: single-buffer to save VMEM.
                return pl.BlockSpec(shape, lambda i, j: (0, 0),
                                    pipeline_mode=pl.Buffered(1))
        else:
            def const_spec(shape):
                return pl.BlockSpec(shape, lambda i, j: (0, 0))
        return pl.pallas_call(
            kernel,
            out_shape=jax.ShapeDtypeStruct((Mp, Vp), out_dtype),
            grid_spec=pltpu.PrefetchScalarGridSpec(
                num_scalar_prefetch=0,
                grid=grid,
                in_specs=[
                    pl.BlockSpec((tm, H), lambda i, j: (i, 0)),   # activation rows
                    const_spec((H, H)),                           # dense weight
                    const_spec((1, H)),                           # dense bias
                    const_spec((1, H)),                           # ln gamma
                    const_spec((1, H)),                           # ln beta
                    pl.BlockSpec((H, tn), lambda i, j: (0, j)),   # decoder weight tile
                    pl.BlockSpec((1, tn), lambda i, j: (0, j)),   # decoder bias tile
                ],
                out_specs=pl.BlockSpec((tm, tn), lambda i, j: (i, j)),
                scratch_shapes=[pltpu.VMEM((tm, H), compute_dtype)],  # hn cache (bf16)
            ),
            compiler_params=pltpu.CompilerParams(
                dimension_semantics=("parallel", "arbitrary"),
                vmem_limit_bytes=48 * 1024 * 1024,   # fits v7x's 64 MiB physical VMEM
            ),
            cost_estimate=cost,
        )(x, w1, b1, gamma, beta, wdec, bdec)

    try:
        out = run(True)
    except Exception:
        # Fallback for jax versions without BlockSpec(pipeline_mode=...) support.
        out = run(False)

    if Mp != M or Vp != V:
        out = out[:M, :V]
    return out.reshape(B, S, V)


def init_params(key, hidden_size, vocab_size):
    k1, k2, k3 = jax.random.split(key, 3)
    scale = 1.0 / math.sqrt(hidden_size)
    return {
        # dense: Linear(H, H) — stored as [in, out]
        "w1": jax.random.normal(k1, (hidden_size, hidden_size), jnp.float32) * scale,
        "b1": jax.random.normal(k2, (1, hidden_size), jnp.float32) * 0.01,
        # LayerNorm default init
        "gamma": jnp.ones((1, hidden_size), jnp.float32),
        "beta": jnp.zeros((1, hidden_size), jnp.float32),
        # decoder: Linear(H, V, bias=False) with tied zero bias parameter
        "w_dec": jax.random.normal(k3, (hidden_size, vocab_size), jnp.float32) * scale,
        "b_dec": jnp.zeros((1, vocab_size), jnp.float32),
    }


def prepare_params(params, compute_dtype=jnp.bfloat16):
    """Cast matmul weights to the MXU compute dtype ONCE, outside the hot path."""
    p = dict(params)
    p["w1"] = params["w1"].astype(compute_dtype)
    p["w_dec"] = params["w_dec"].astype(compute_dtype)
    p["b1"] = params["b1"].astype(jnp.float32)
    p["gamma"] = params["gamma"].astype(jnp.float32)
    p["beta"] = params["beta"].astype(jnp.float32)
    p["b_dec"] = params["b_dec"].astype(jnp.float32)
    return p


if __name__ == "__main__":
    batch, seq, hidden, vocab = 2, 8, 32, 128
    key = jax.random.PRNGKey(0)
    kx, kp = jax.random.split(key)

    hidden_states = jax.random.normal(kx, (batch, seq, hidden), jnp.float32)
    # `labels` is accepted by the PyTorch forward but unused; kept for parity.
    labels = jnp.zeros((batch, seq), jnp.int32)

    params = prepare_params(init_params(kp, hidden, vocab))

    predictions = mlm_head(hidden_states, params)
    jax.block_until_ready(predictions)

    # Reference in plain JAX, mirroring the kernel's bf16-operand /
    # f32-accumulation matmuls and the bf16 hn feeding the decoder.
    x = hidden_states.reshape(-1, hidden).astype(jnp.bfloat16)
    h = jnp.dot(x, params["w1"], preferred_element_type=jnp.float32) + params["b1"]
    h = 0.5 * h * (1.0 + lax.erf(h / math.sqrt(2.0)))
    mu = h.mean(-1, keepdims=True)
    var = ((h - mu) ** 2).mean(-1, keepdims=True)
    hn = ((h - mu) * lax.rsqrt(var + 1e-12) * params["gamma"]
          + params["beta"]).astype(jnp.bfloat16)
    ref = (jnp.dot(hn, params["w_dec"], preferred_element_type=jnp.float32)
           + params["b_dec"]).reshape(batch, seq, vocab)

    assert predictions.shape == (batch, seq, vocab)
    pred_f32 = predictions.astype(jnp.float32)
    assert jnp.allclose(pred_f32, ref, atol=5e-2, rtol=5e-2), (
        float(jnp.max(jnp.abs(pred_f32 - ref))))

    print("KERNEL_OK")
</pallas_src>

<mosaic_0001>
module attributes {stable_mosaic.version = 11 : i64} {
  func.func @mlm_head_kernel(%arg0: i32, %arg1: i32, %arg2: memref<16x32xbf16, #tpu.memory_space<vmem>>, %arg3: memref<32x32xbf16, #tpu.memory_space<vmem>>, %arg4: memref<1x32xf32, #tpu.memory_space<vmem>>, %arg5: memref<1x32xf32, #tpu.memory_space<vmem>>, %arg6: memref<1x32xf32, #tpu.memory_space<vmem>>, %arg7: memref<32x128xbf16, #tpu.memory_space<vmem>>, %arg8: memref<1x128xf32, #tpu.memory_space<vmem>>, %arg9: memref<16x128xbf16, #tpu.memory_space<vmem>>, %arg10: memref<16x32xbf16, #tpu.memory_space<vmem>>) attributes {dimension_semantics = [#tpu.dimension_semantics<parallel>, #tpu.dimension_semantics<arbitrary>], iteration_bounds = array<i64: 1, 1>, scalar_prefetch = 0 : i64, scratch_operands = 1 : i64, tpu.core_type = #tpu.core_type<tc>, window_params = [{transform_indices = @transform_0, window_bounds = array<i64: 16, 32>}, {pipeline_mode = #tpu.pipeline_mode<synchronous>, transform_indices = @transform_1, window_bounds = array<i64: 32, 32>}, {pipeline_mode = #tpu.pipeline_mode<synchronous>, transform_indices = @transform_2, window_bounds = array<i64: 1, 32>}, {pipeline_mode = #tpu.pipeline_mode<synchronous>, transform_indices = @transform_3, window_bounds = array<i64: 1, 32>}, {pipeline_mode = #tpu.pipeline_mode<synchronous>, transform_indices = @transform_4, window_bounds = array<i64: 1, 32>}, {transform_indices = @transform_5, window_bounds = array<i64: 32, 128>}, {transform_indices = @transform_6, window_bounds = array<i64: 1, 128>}, {transform_indices = @transform_7, window_bounds = array<i64: 16, 128>}]} {
    %c0_i32 = arith.constant 0 : i32
    %0 = arith.cmpi eq, %arg1, %c0_i32 : i32
    %1 = arith.extui %0 : i1 to i32
    %c0_i32_0 = arith.constant 0 : i32
    %2 = arith.cmpi ne, %1, %c0_i32_0 : i32
    scf.if %2 {
      %c0_8 = arith.constant 0 : index
      %c0_9 = arith.constant 0 : index
      %11 = vector.load %arg2[%c0_8, %c0_9] : memref<16x32xbf16, #tpu.memory_space<vmem>>, vector<16x32xbf16>
      %c0_10 = arith.constant 0 : index
      %c0_11 = arith.constant 0 : index
      %12 = vector.load %arg3[%c0_10, %c0_11] : memref<32x32xbf16, #tpu.memory_space<vmem>>, vector<32x32xbf16>
      %cst_12 = arith.constant dense<0.000000e+00> : vector<16x32xf32>
      %13 = tpu.matmul %11, %12, %cst_12 {dimension_numbers = #tpu.dot_dimension_numbers<[1], [0], [0], [1], [0, 0, 1, 1], [], []>} : vector<16x32xbf16>, vector<32x32xbf16>, vector<16x32xf32> -> vector<16x32xf32>
      %c0_13 = arith.constant 0 : index
      %c0_14 = arith.constant 0 : index
      %14 = vector.load %arg4[%c0_13, %c0_14] : memref<1x32xf32, #tpu.memory_space<vmem>>, vector<1x32xf32>
      %15 = vector.broadcast %14 : vector<1x32xf32> to vector<16x32xf32>
      %16 = arith.addf %13, %15 : vector<16x32xf32>
      %cst_15 = arith.constant 5.000000e-01 : f32
      %17 = vector.broadcast %cst_15 : f32 to vector<16x32xf32>
      %18 = arith.mulf %17, %16 : vector<16x32xf32>
      %cst_16 = arith.constant 0.707106769 : f32
      %19 = vector.broadcast %cst_16 : f32 to vector<16x32xf32>
      %20 = arith.mulf %16, %19 : vector<16x32xf32>
      %21 = math.erf %20 : vector<16x32xf32>
      %cst_17 = arith.constant 1.000000e+00 : f32
      %22 = vector.broadcast %cst_17 : f32 to vector<16x32xf32>
      %23 = arith.addf %22, %21 : vector<16x32xf32>
      %24 = arith.mulf %18, %23 : vector<16x32xf32>
      %cst_18 = arith.constant dense<0.000000e+00> : vector<16xf32>
      %25 = vector.multi_reduction <add>, %24, %cst_18 [1] : vector<16x32xf32> to vector<16xf32>
      %26 = vector.shape_cast %25 : vector<16xf32> to vector<16x1xf32>
      %cst_19 = arith.constant 3.200000e+01 : f32
      %27 = vector.broadcast %cst_19 : f32 to vector<16x1xf32>
      %28 = arith.divf %26, %27 : vector<16x1xf32>
      %29 = vector.broadcast %28 : vector<16x1xf32> to vector<16x32xf32>
      %30 = arith.subf %24, %29 : vector<16x32xf32>
      %31 = arith.mulf %30, %30 : vector<16x32xf32>
      %cst_20 = arith.constant dense<0.000000e+00> : vector<16xf32>
      %32 = vector.multi_reduction <add>, %31, %cst_20 [1] : vector<16x32xf32> to vector<16xf32>
      %33 = vector.shape_cast %32 : vector<16xf32> to vector<16x1xf32>
      %cst_21 = arith.constant 3.200000e+01 : f32
      %34 = vector.broadcast %cst_21 : f32 to vector<16x1xf32>
      %35 = arith.divf %33, %34 : vector<16x1xf32>
      %cst_22 = arith.constant 9.99999996E-13 : f32
      %36 = vector.broadcast %cst_22 : f32 to vector<16x1xf32>
      %37 = arith.addf %35, %36 : vector<16x1xf32>
      %38 = math.rsqrt %37 : vector<16x1xf32>
      %39 = vector.broadcast %38 : vector<16x1xf32> to vector<16x32xf32>
      %40 = arith.mulf %30, %39 : vector<16x32xf32>
      %c0_23 = arith.constant 0 : index
      %c0_24 = arith.constant 0 : index
      %41 = vector.load %arg5[%c0_23, %c0_24] : memref<1x32xf32, #tpu.memory_space<vmem>>, vector<1x32xf32>
      %42 = vector.broadcast %41 : vector<1x32xf32> to vector<16x32xf32>
      %43 = arith.mulf %40, %42 : vector<16x32xf32>
      %c0_25 = arith.constant 0 : index
      %c0_26 = arith.constant 0 : index
      %44 = vector.load %arg6[%c0_25, %c0_26] : memref<1x32xf32, #tpu.memory_space<vmem>>, vector<1x32xf32>
      %45 = vector.broadcast %44 : vector<1x32xf32> to vector<16x32xf32>
      %46 = arith.addf %43, %45 : vector<16x32xf32>
      %47 = arith.truncf %46 : vector<16x32xf32> to vector<16x32xbf16>
      %c0_27 = arith.constant 0 : index
      %c0_28 = arith.constant 0 : index
      %48 = vector.load %arg10[%c0_27, %c0_28] : memref<16x32xbf16, #tpu.memory_space<vmem>>, vector<16x32xbf16>
      tpu.vector_store %arg10[%c0_27, %c0_28], %47 {strides = array<i32>} : memref<16x32xbf16, #tpu.memory_space<vmem>>, vector<16x32xbf16>,
    } else {
    }
    %c0 = arith.constant 0 : index
    %c0_1 = arith.constant 0 : index
    %3 = vector.load %arg10[%c0, %c0_1] : memref<16x32xbf16, #tpu.memory_space<vmem>>, vector<16x32xbf16>
    %c0_2 = arith.constant 0 : index
    %c0_3 = arith.constant 0 : index
    %4 = vector.load %arg7[%c0_2, %c0_3] : memref<32x128xbf16, #tpu.memory_space<vmem>>, vector<32x128xbf16>
    %cst = arith.constant dense<0.000000e+00> : vector<16x128xf32>
    %5 = tpu.matmul %3, %4, %cst {dimension_numbers = #tpu.dot_dimension_numbers<[1], [0], [0], [1], [0, 0, 1, 1], [], []>} : vector<16x32xbf16>, vector<32x128xbf16>, vector<16x128xf32> -> vector<16x128xf32>
    %c0_4 = arith.constant 0 : index
    %c0_5 = arith.constant 0 : index
    %6 = vector.load %arg8[%c0_4, %c0_5] : memref<1x128xf32, #tpu.memory_space<vmem>>, vector<1x128xf32>
    %7 = vector.broadcast %6 : vector<1x128xf32> to vector<16x128xf32>
    %8 = arith.addf %5, %7 : vector<16x128xf32>
    %9 = arith.truncf %8 : vector<16x128xf32> to vector<16x128xbf16>
    %c0_6 = arith.constant 0 : index
    %c0_7 = arith.constant 0 : index
    %10 = vector.load %arg9[%c0_6, %c0_7] : memref<16x128xbf16, #tpu.memory_space<vmem>>, vector<16x128xbf16>
    tpu.vector_store %arg9[%c0_6, %c0_7], %9 {strides = array<i32>} : memref<16x128xbf16, #tpu.memory_space<vmem>>, vector<16x128xbf16>,
    return
  }
  func.func @transform_0(%arg0: i32, %arg1: i32) -> (i32, i32) {
    %c0_i32 = arith.constant 0 : i32
    %c0_i32_0 = arith.constant 0 : i32
    return %arg0, %c0_i32 : i32, i32
  }
  func.func @transform_1(%arg0: i32, %arg1: i32) -> (i32, i32) {
    %c0_i32 = arith.constant 0 : i32
    %c0_i32_0 = arith.constant 0 : i32
    %c0_i32_1 = arith.constant 0 : i32
    return %c0_i32, %c0_i32_0 : i32, i32
  }
  func.func @transform_2(%arg0: i32, %arg1: i32) -> (i32, i32) {
    %c0_i32 = arith.constant 0 : i32
    %c0_i32_0 = arith.constant 0 : i32
    %c0_i32_1 = arith.constant 0 : i32
    return %c0_i32, %c0_i32_0 : i32, i32
  }
  func.func @transform_3(%arg0: i32, %arg1: i32) -> (i32, i32) {
    %c0_i32 = arith.constant 0 : i32
    %c0_i32_0 = arith.constant 0 : i32
    %c0_i32_1 = arith.constant 0 : i32
    return %c0_i32, %c0_i32_0 : i32, i32
  }
  func.func @transform_4(%arg0: i32, %arg1: i32) -> (i32, i32) {
    %c0_i32 = arith.constant 0 : i32
    %c0_i32_0 = arith.constant 0 : i32
    %c0_i32_1 = arith.constant 0 : i32
    return %c0_i32, %c0_i32_0 : i32, i32
  }
  func.func @transform_5(%arg0: i32, %arg1: i32) -> (i32, i32) {
    %c0_i32 = arith.constant 0 : i32
    %c0_i32_0 = arith.constant 0 : i32
    return %c0_i32, %arg1 : i32, i32
  }
  func.func @transform_6(%arg0: i32, %arg1: i32) -> (i32, i32) {
    %c0_i32 = arith.constant 0 : i32
    %c0_i32_0 = arith.constant 0 : i32
    return %c0_i32, %arg1 : i32, i32
  }
  func.func @transform_7(%arg0: i32, %arg1: i32) -> (i32, i32) {
    %c0_i32 = arith.constant 0 : i32
    return %arg0, %arg1 : i32, i32
  }
}

module attributes {stable_mosaic.version = 11 : i64} {
  func.func @mlm_head_kernel(%arg0: i32, %arg1: i32, %arg2: memref<16x32xbf16, #tpu.memory_space<vmem>>, %arg3: memref<32x32xbf16, #tpu.memory_space<vmem>>, %arg4: memref<1x32xf32, #tpu.memory_space<vmem>>, %arg5: memref<1x32xf32, #tpu.memory_space<vmem>>, %arg6: memref<1x32xf32, #tpu.memory_space<vmem>>, %arg7: memref<32x128xbf16, #tpu.memory_space<vmem>>, %arg8: memref<1x128xf32, #tpu.memory_space<vmem>>, %arg9: memref<16x128xbf16, #tpu.memory_space<vmem>>, %arg10: memref<16x32xbf16, #tpu.memory_space<vmem>>) attributes {dimension_semantics = [#tpu.dimension_semantics<parallel>, #tpu.dimension_semantics<arbitrary>], iteration_bounds = array<i64: 1, 1>, scalar_prefetch = 0 : i64, scratch_operands = 1 : i64, tpu.core_type = #tpu.core_type<tc>, window_params = [{transform_indices = @transform_0, window_bounds = array<i64: 16, 32>}, {pipeline_mode = #tpu.pipeline_mode<synchronous>, transform_indices = @transform_1, window_bounds = array<i64: 32, 32>}, {pipeline_mode = #tpu.pipeline_mode<synchronous>, transform_indices = @transform_2, window_bounds = array<i64: 1, 32>}, {pipeline_mode = #tpu.pipeline_mode<synchronous>, transform_indices = @transform_3, window_bounds = array<i64: 1, 32>}, {pipeline_mode = #tpu.pipeline_mode<synchronous>, transform_indices = @transform_4, window_bounds = array<i64: 1, 32>}, {transform_indices = @transform_5, window_bounds = array<i64: 32, 128>}, {transform_indices = @transform_6, window_bounds = array<i64: 1, 128>}, {transform_indices = @transform_7, window_bounds = array<i64: 16, 128>}]} {
    %c0_i32 = arith.constant 0 : i32
    %0 = arith.cmpi eq, %arg1, %c0_i32 : i32
    %1 = arith.extui %0 : i1 to i32
    %c0_i32_0 = arith.constant 0 : i32
    %2 = arith.cmpi ne, %1, %c0_i32_0 : i32
    scf.if %2 {
      %c0_8 = arith.constant 0 : index
      %c0_9 = arith.constant 0 : index
      %11 = vector.load %arg2[%c0_8, %c0_9] : memref<16x32xbf16, #tpu.memory_space<vmem>>, vector<16x32xbf16>
      %c0_10 = arith.constant 0 : index
      %c0_11 = arith.constant 0 : index
      %12 = vector.load %arg3[%c0_10, %c0_11] : memref<32x32xbf16, #tpu.memory_space<vmem>>, vector<32x32xbf16>
      %cst_12 = arith.constant dense<0.000000e+00> : vector<16x32xf32>
      %13 = tpu.matmul %11, %12, %cst_12 {dimension_numbers = #tpu.dot_dimension_numbers<[1], [0], [0], [1], [0, 0, 1, 1], [], []>} : vector<16x32xbf16>, vector<32x32xbf16>, vector<16x32xf32> -> vector<16x32xf32>
      %c0_13 = arith.constant 0 : index
      %c0_14 = arith.constant 0 : index
      %14 = vector.load %arg4[%c0_13, %c0_14] : memref<1x32xf32, #tpu.memory_space<vmem>>, vector<1x32xf32>
      %15 = vector.broadcast %14 : vector<1x32xf32> to vector<16x32xf32>
      %16 = arith.addf %13, %15 : vector<16x32xf32>
      %cst_15 = arith.constant 5.000000e-01 : f32
      %17 = vector.broadcast %cst_15 : f32 to vector<16x32xf32>
      %18 = arith.mulf %17, %16 : vector<16x32xf32>
      %cst_16 = arith.constant 0.707106769 : f32
      %19 = vector.broadcast %cst_16 : f32 to vector<16x32xf32>
      %20 = arith.mulf %16, %19 : vector<16x32xf32>
      %21 = math.erf %20 : vector<16x32xf32>
      %cst_17 = arith.constant 1.000000e+00 : f32
      %22 = vector.broadcast %cst_17 : f32 to vector<16x32xf32>
      %23 = arith.addf %22, %21 : vector<16x32xf32>
      %24 = arith.mulf %18, %23 : vector<16x32xf32>
      %cst_18 = arith.constant dense<0.000000e+00> : vector<16xf32>
      %25 = vector.multi_reduction <add>, %24, %cst_18 [1] : vector<16x32xf32> to vector<16xf32>
      %26 = vector.shape_cast %25 : vector<16xf32> to vector<16x1xf32>
      %cst_19 = arith.constant 3.200000e+01 : f32
      %27 = vector.broadcast %cst_19 : f32 to vector<16x1xf32>
      %28 = arith.divf %26, %27 : vector<16x1xf32>
      %29 = vector.broadcast %28 : vector<16x1xf32> to vector<16x32xf32>
      %30 = arith.subf %24, %29 : vector<16x32xf32>
      %31 = arith.mulf %30, %30 : vector<16x32xf32>
      %cst_20 = arith.constant dense<0.000000e+00> : vector<16xf32>
      %32 = vector.multi_reduction <add>, %31, %cst_20 [1] : vector<16x32xf32> to vector<16xf32>
      %33 = vector.shape_cast %32 : vector<16xf32> to vector<16x1xf32>
      %cst_21 = arith.constant 3.200000e+01 : f32
      %34 = vector.broadcast %cst_21 : f32 to vector<16x1xf32>
      %35 = arith.divf %33, %34 : vector<16x1xf32>
      %cst_22 = arith.constant 9.99999996E-13 : f32
      %36 = vector.broadcast %cst_22 : f32 to vector<16x1xf32>
      %37 = arith.addf %35, %36 : vector<16x1xf32>
      %38 = math.rsqrt %37 : vector<16x1xf32>
      %39 = vector.broadcast %38 : vector<16x1xf32> to vector<16x32xf32>
      %40 = arith.mulf %30, %39 : vector<16x32xf32>
      %c0_23 = arith.constant 0 : index
      %c0_24 = arith.constant 0 : index
      %41 = vector.load %arg5[%c0_23, %c0_24] : memref<1x32xf32, #tpu.memory_space<vmem>>, vector<1x32xf32>
      %42 = vector.broadcast %41 : vector<1x32xf32> to vector<16x32xf32>
      %43 = arith.mulf %40, %42 : vector<16x32xf32>
      %c0_25 = arith.constant 0 : index
      %c0_26 = arith.constant 0 : index
      %44 = vector.load %arg6[%c0_25, %c0_26] : memref<1x32xf32, #tpu.memory_space<vmem>>, vector<1x32xf32>
      %45 = vector.broadcast %44 : vector<1x32xf32> to vector<16x32xf32>
      %46 = arith.addf %43, %45 : vector<16x32xf32>
      %47 = arith.truncf %46 : vector<16x32xf32> to vector<16x32xbf16>
      %c0_27 = arith.constant 0 : index
      %c0_28 = arith.constant 0 : index
      %48 = vector.load %arg10[%c0_27, %c0_28] : memref<16x32xbf16, #tpu.memory_space<vmem>>, vector<16x32xbf16>
      tpu.vector_store %arg10[%c0_27, %c0_28], %47 {strides = array<i32>} : memref<16x32xbf16, #tpu.memory_space<vmem>>, vector<16x32xbf16>,
    } else {
    }
    %c0 = arith.constant 0 : index
    %c0_1 = arith.constant 0 : index
    %3 = vector.load %arg10[%c0, %c0_1] : memref<16x32xbf16, #tpu.memory_space<vmem>>, vector<16x32xbf16>
    %c0_2 = arith.constant 0 : index
    %c0_3 = arith.constant 0 : index
    %4 = vector.load %arg7[%c0_2, %c0_3] : memref<32x128xbf16, #tpu.memory_space<vmem>>, vector<32x128xbf16>
    %cst = arith.constant dense<0.000000e+00> : vector<16x128xf32>
    %5 = tpu.matmul %3, %4, %cst {dimension_numbers = #tpu.dot_dimension_numbers<[1], [0], [0], [1], [0, 0, 1, 1], [], []>} : vector<16x32xbf16>, vector<32x128xbf16>, vector<16x128xf32> -> vector<16x128xf32>
    %c0_4 = arith.constant 0 : index
    %c0_5 = arith.constant 0 : index
    %6 = vector.load %arg8[%c0_4, %c0_5] : memref<1x128xf32, #tpu.memory_space<vmem>>, vector<1x128xf32>
    %7 = vector.broadcast %6 : vector<1x128xf32> to vector<16x128xf32>
    %8 = arith.addf %5, %7 : vector<16x128xf32>
    %9 = arith.truncf %8 : vector<16x128xf32> to vector<16x128xbf16>
    %c0_6 = arith.constant 0 : index
    %c0_7 = arith.constant 0 : index
    %10 = vector.load %arg9[%c0_6, %c0_7] : memref<16x128xbf16, #tpu.memory_space<vmem>>, vector<16x128xbf16>
    tpu.vector_store %arg9[%c0_6, %c0_7], %9 {strides = array<i32>} : memref<16x128xbf16, #tpu.memory_space<vmem>>, vector<16x128xbf16>,
    return
  }
  func.func @transform_0(%arg0: i32, %arg1: i32) -> (i32, i32) {
    %c0_i32 = arith.constant 0 : i32
    %c0_i32_0 = arith.constant 0 : i32
    return %arg0, %c0_i32 : i32, i32
  }
  func.func @transform_1(%arg0: i32, %arg1: i32) -> (i32, i32) {
    %c0_i32 = arith.constant 0 : i32
    %c0_i32_0 = arith.constant 0 : i32
    %c0_i32_1 = arith.constant 0 : i32
    return %c0_i32, %c0_i32_0 : i32, i32
  }
  func.func @transform_2(%arg0: i32, %arg1: i32) -> (i32, i32) {
    %c0_i32 = arith.constant 0 : i32
    %c0_i32_0 = arith.constant 0 : i32
    %c0_i32_1 = arith.constant 0 : i32
    return %c0_i32, %c0_i32_0 : i32, i32
  }
  func.func @transform_3(%arg0: i32, %arg1: i32) -> (i32, i32) {
    %c0_i32 = arith.constant 0 : i32
    %c0_i32_0 = arith.constant 0 : i32
    %c0_i32_1 = arith.constant 0 : i32
    return %c0_i32, %c0_i32_0 : i32, i32
  }
  func.func @transform_4(%arg0: i32, %arg1: i32) -> (i32, i32) {
    %c0_i32 = arith.constant 0 : i32
    %c0_i32_0 = arith.constant 0 : i32
    %c0_i32_1 = arith.constant 0 : i32
    return %c0_i32, %c0_i32_0 : i32, i32
  }
  func.func @transform_5(%arg0: i32, %arg1: i32) -> (i32, i32) {
    %c0_i32 = arith.constant 0 : i32
    %c0_i32_0 = arith.constant 0 : i32
    return %c0_i32, %arg1 : i32, i32
  }
  func.func @transform_6(%arg0: i32, %arg1: i32) -> (i32, i32) {
    %c0_i32 = arith.constant 0 : i32
    %c0_i32_0 = arith.constant 0 : i32
    return %c0_i32, %arg1 : i32, i32
  }
  func.func @transform_7(%arg0: i32, %arg1: i32) -> (i32, i32) {
    %c0_i32 = arith.constant 0 : i32
    return %arg0, %arg1 : i32, i32
  }
}

</mosaic_0001>

<bundles_post_ra>
// kernel: tpu_custom_call.1
= control target key start
LH: loop header
LB: loop body
LE: loop exit
PB: predicated region body
PF: predicated region fallthrough
CT: control target
= control target key end

     0   :  { %12 = vsyncpa [#allocation4], 0  ;;  %s562_s0 = inlined_call_operand.hbm [shape: bf16[16,32], index: 0, kind: input, shape index: {}]   ;;  %s563_s1 = inlined_call_operand.hbm [shape: bf16[32,32], index: 1, kind: input, shape index: {}]   ;;  %s564_s2 = inlined_call_operand.vmem [shape: f32[1,32], index: 2, kind: input, shape index: {}]   ;;  %s565_s3 = inlined_call_operand.vmem [shape: f32[1,32], index: 3, kind: input, shape index: {}]   ;;  %s566_s4 = inlined_call_operand.vmem [shape: f32[1,32], index: 4, kind: input, shape index: {}]   ;;  %s567_s5 = inlined_call_operand.hbm [shape: bf16[32,128], index: 5, kind: input, shape index: {}]   ;;  %s568_s6 = inlined_call_operand.vmem [shape: f32[1,128], index: 6, kind: input, shape index: {}]   ;;  %s569_s7 = inlined_call_operand.hbm [shape: bf16[16,128], index: 7, kind: output, shape index: {}]  }
   0x1   :  { %13 = vsyncpa [#allocation7], 0 }
   0x2   :  { %14 = vsyncpa [#allocation5], 0  ;;  %s472_s24 = smov [#allocation6]   ;;  %s473_s26 = smov [#allocation3]  }
   0x3   :  { %s32_s25 = sshll.u32 %s472_s24, 4  ;;  %s20_s27 = sshll.u32 %s473_s26, 4  ;;  %s33_s25 = int_to_ptr.vmem [resolvable:$true] %s32_s25  ;;  %s21_s27 = int_to_ptr.vmem [resolvable:$true] %s20_s27 }
   0x4   :  { %s394_s28 = scalar_lea.vmem %s33_s25, 256  ;;  %p399_p1 = scmp.lt.s32.totalorder %s33_s25, %s33_s25 }
   0x5   :  { %p395_p0 = scmp.ne.s32.totalorder %s33_s25, %s394_s28  ;;  %p400_p2 = scmp.lt.s32.totalorder %s394_s28, %s394_s28 }
   0x7   :  { %p401_p3 = por %p400_p2, %p399_p1 }
   0x9   :  { %p402_p4 = pnand %p401_p3, %p395_p0 }
   0xb   :  { %405 = shalt.err (!%p402_p4)
}
   0xc   :  { %s474_s29 = smov 64   ;;  %s475_s30 = smov 4  }
   0xd   :  { %38 = dma.hbm_to_vmem [thread:$0]  %s563_s1, 256, %s33_s25, [#allocation7], %s474_s29, %s474_s29, %s475_s30  }
   0xe   :  { %s414_s10 = scalar_lea.vmem %s21_s27, 128  ;;  %p419_p6 = scmp.lt.s32.totalorder %s21_s27, %s21_s27 }
   0xf   :  { %p415_p5 = scmp.ne.s32.totalorder %s21_s27, %s414_s10  ;;  %p420_p7 = scmp.lt.s32.totalorder %s414_s10, %s414_s10 }
  0x11   :  { %p421_p8 = por %p420_p7, %p419_p6 }
  0x13   :  { %p422_p9 = pnand %p421_p8, %p415_p5 }
  0x15   :  { %425 = shalt.err (!%p422_p9)
}
  0x16   :  { %26 = dma.hbm_to_vmem [thread:$0]  %s562_s0, 128, %s21_s27, [#allocation4], %s474_s29, %s474_s29, %s475_s30  }
  0x17   :  { %s476_s13 = smov [#allocation8]  }
  0x18   :  { %s50_s14 = sshll.u32 %s476_s13, 4  ;;  %s51_s14 = int_to_ptr.vmem [resolvable:$true] %s50_s14 }
  0x19   :  { %s434_s15 = scalar_lea.vmem %s51_s14, 256  ;;  %p439_p11 = scmp.lt.s32.totalorder %s51_s14, %s51_s14 }
  0x1a   :  { %p435_p10 = scmp.ne.s32.totalorder %s51_s14, %s434_s15  ;;  %p440_p12 = scmp.lt.s32.totalorder %s434_s15, %s434_s15 }
  0x1c   :  { %p441_p13 = por %p440_p12, %p439_p11 }
  0x1e   :  { %p442_p0 = pnand %p441_p13, %p435_p10 }
  0x20   :  { %445 = shalt.err (!%p442_p0)
}
  0x21   :  { %56 = dma.hbm_to_vmem [thread:$0]  %s567_s5, 256, %s51_s14, [#allocation7], %s474_s29, %s474_s29, %s475_s30  }
  0x22   :  { %466 = dma.done.wait [#allocation4], 128  }
  0x23   :  { %467 = vsyncadd [#allocation4], 4294967168 }
  0x24   :  { %468 = dma.done.wait [#allocation7], 512  }
  0x25   :  { %469 = vsyncadd [#allocation7], 4294966784  ;;  %v477_v0 = vmov 0.0   ;;  %vm478_vm0 = vmmov 0   ;;  %v372_v1 = vld [vmem:[#allocation6 + $0x8] sm:$0xff]   ;;  %v373_v2 = vld [vmem:[#allocation6] sm:$0xff]  }
  0x26   :  { %348 = vmatprep.subr.bf16.mxu0 %v477_v0  ;;  %352 = vmatprep.mubr.msk.bf16.mxu0 %vm478_vm0, %v477_v0  ;;  %v374_v3 = vld [vmem:[#allocation3] sm:$0xff]   ;;  %vm103_vm1 = vcmask 261120   ;;  %v317_v4 = vld [vmem:[%s564_s2] ss:$0 sm:$0xff]  ;;  %vm211_vm2 = vcmask 257024  }
  0x27   :  { %356 = vmatprep.subr.bf16.mxu1 %v477_v0  ;;  %360 = vmatprep.mubr.msk.bf16.mxu1 %vm478_vm0, %v477_v0  ;;  %v375_v33 = vld [vmem:[#allocation8 + $0x8] sm:$0xff]   ;;  %v376_v34 = vld [vmem:[#allocation8] sm:$0xff]  }
  0x28   :  { %349 = vmatpush3.bf16.msra.mxu0 %v372_v1  ;;  %357 = vmatpush3.bf16.msra.mxu1 %v375_v33  ;;  %v322_v42 = vld [vmem:[%s565_s3] ss:$0 sm:$0xff] }
  0x29   :  { %350 = vmatprep.subr.bf16.mxu0 %v477_v0  ;;  %358 = vmatprep.subr.bf16.mxu1 %v477_v0  ;;  %v323_v44 = vld [vmem:[%s566_s4] ss:$0 sm:$0xff]  ;;  %s479_s4 = smov [#allocation9]  }
  0x2a   :  { %v326_v55 = vld [vmem:[%s568_s6] ss:$0 sm:$0xff]  ;;  %s304_s21 = sshll.u32 %s479_s4, 4  ;;  %s305_s21 = int_to_ptr.vmem [resolvable:$true] %s304_s21 }
  0x2b   :  { %s446_s22 = scalar_lea.vmem %s305_s21, 128  ;;  %p451_p2 = scmp.lt.s32.totalorder %s305_s21, %s305_s21 }
  0x2c   :  { %351 = vmatpush3.bf16.msra.mxu0 %v373_v2  ;;  %359 = vmatpush3.bf16.msra.mxu1 %v376_v34  ;;  %p447_p1 = scmp.ne.s32.totalorder %s305_s21, %s446_s22  ;;  %p452_p3 = scmp.lt.s32.totalorder %s446_s22, %s446_s22 }
  0x2e   :  { %p453_p4 = por %p452_p3, %p451_p2 }
  0x2f   :  { %353 = vmatmul.mubr.msk.bf16.vlgmr.msra.gmra.mxu0 %vm103_vm1, %v374_v3 }
  0x30   :  { %p454_p5 = pnand %p453_p4, %p447_p1 }
  0xef   :  { %v141_v5 = vpop.f32.mrf.mxu0 }
  0xf0   :  { %v142_v6 = vadd.f32 %v317_v4, %v141_v5 }
  0xf1   :  { %v354_v7 = vpop.f32.mrf.mxu0 }
  0xf2   :  { %v150_v8 = vmul.f32 0.70710677, %v142_v6  ;;  %v148_v14 = vmul.f32 0.5, %v142_v6 }
  0xf3   :  { %v144_v9 = vpop.f32.mrf.mxu0 }
  0xf4   :  { %378 = verf.f32 %v150_v8  ;;  %v145_v10 = vadd.f32 %v317_v4, %v144_v9 }
  0xf5   :  { %v355_v11 = vpop.f32.mrf.mxu0 }
  0xf6   :  { %v151_v12 = vmul.f32 0.70710677, %v145_v10  ;;  %v149_v18 = vmul.f32 0.5, %v145_v10 }
  0xf8   :  { %380 = verf.f32 %v151_v12 }
 0x101   :  { %v379_v13 = vpop.eup %378 }
 0x102   :  { %v154_v15 = vadd.f32 1.0, %v379_v13 }
 0x104   :  { %v156_v16 = vmul.f32 %v154_v15, %v148_v14 }
 0x105   :  { %v381_v17 = vpop.eup %380 }
 0x106   :  { %v158_v19 = vsel %vm103_vm1, %v156_v16, 0.0  ;;  %v155_v20 = vadd.f32 1.0, %v381_v17 }
 0x107   :  { %159 = vadd.xlane.f32.xlu0 %v158_v19 }
 0x108   :  { %v157_v21 = vmul.f32 %v155_v20, %v149_v18 }
 0x10a   :  { %v161_v22 = vsel %vm103_vm1, %v157_v21, 0.0 }
 0x10b   :  { %162 = vadd.xlane.f32.xlu0 %v161_v22 }
 0x190   :  { %v160_v23 = vpop.xlane.xlu0 %159 }
 0x191   :  { %v165_v24 = vmul.f32 0.03125, %v160_v23 }
 0x193   :  { %v167_v25 = vsub.f32 %v156_v16, %v165_v24 }
 0x194   :  { %v163_v26 = vpop.xlane.xlu0 %162 }
 0x195   :  { %v166_v27 = vmul.f32 0.03125, %v163_v26  ;;  %v169_v28 = vmul.f32 %v167_v25, %v167_v25 }
 0x197   :  { %v168_v29 = vsub.f32 %v157_v21, %v166_v27  ;;  %v171_v30 = vsel %vm103_vm1, %v169_v28, 0.0 }
 0x198   :  { %172 = vadd.xlane.f32.xlu1 %v171_v30 }
 0x199   :  { %v170_v31 = vmul.f32 %v168_v29, %v168_v29 }
 0x19b   :  { %v174_v32 = vsel %vm103_vm1, %v170_v31, 0.0 }
 0x19c   :  { %175 = vadd.xlane.f32.xlu1 %v174_v32 }
 0x221   :  { %v173_v35 = vpop.xlane.xlu1 %172 }
 0x222   :  { %v177_v36 = vmul.f32 0.03125, %v173_v35 }
 0x224   :  { %v179_v37 = vadd.f32 1e-12, %v177_v36 }
 0x225   :  { %v176_v38 = vpop.xlane.xlu1 %175 }
 0x226   :  { %382 = vrsqrt.f32 %v179_v37  ;;  %v178_v39 = vmul.f32 0.03125, %v176_v38 }
 0x228   :  { %v180_v40 = vadd.f32 1e-12, %v178_v39 }
 0x22a   :  { %384 = vrsqrt.f32 %v180_v40 }
 0x233   :  { %v383_v41 = vpop.eup %382 }
 0x234   :  { %v183_v43 = vmul.f32 %v383_v41, %v167_v25 }
 0x236   :  { %v192_v45 = vmul.f32 %v322_v42, %v183_v43 }
 0x237   :  { %v385_v46 = vpop.eup %384 }
 0x238   :  { %v201_v47 = vadd.f32 %v323_v44, %v192_v45  ;;  %v184_v48 = vmul.f32 %v385_v46, %v168_v29 }
 0x23a   :  { %v333_v49 = vpack.c.bf16 %v201_v47, %v201_v47  ;;  %v193_v50 = vmul.f32 %v322_v42, %v184_v48 }
 0x23c   :  { %212 = vst.msk [vmem:[#allocation2] sm:$0xf] %vm211_vm2, %v333_v49  ;;  %v202_v51 = vadd.f32 %v323_v44, %v193_v50 }
 0x23e   :  { %v334_v52 = vpack.c.bf16 %v202_v51, %v202_v51 }
 0x240   :  { %213 = vst.msk [vmem:[#allocation2 + $0x4] sm:$0xf] %vm211_vm2, %v334_v52 }
 0x247   :  { %v377_v53 = vld [vmem:[#allocation2] sm:$0xff]  }
 0x248   :  { %361 = vmatmul.mubr.msk.bf16.vlgmr.msra.gmra.mxu1 %vm103_vm1, %v377_v53 }
 0x308   :  { %v282_v54 = vpop.f32.mrf.mxu1 }
 0x309   :  { %v283_v58 = vadd.f32 %v326_v55, %v282_v54 }
 0x30a   :  { %v362_v56 = vpop.f32.mrf.mxu1 }
 0x30c   :  { %v285_v57 = vpop.f32.mrf.mxu1 }
 0x30d   :  { %v286_v59 = vadd.f32 %v326_v55, %v285_v57 }
 0x30e   :  { %v363_v60 = vpop.f32.mrf.mxu1 }
 0x30f   :  { %v340_v61 = vpack.c.bf16 %v286_v59, %v283_v58 }
 0x311   :  { %341 = vst [vmem:[#allocation9] sm:$0xff] %v340_v61  }
 0x312   :  { %457 = shalt.err (!%p454_p5)
}
 0x313   :  { %310 = dma.vmem_to_hbm [thread:$0]  %s305_s21, 128, %s569_s7, [#allocation5], %s474_s29, %s474_s29, %s475_s30  }
 0x314   :  { %470 = dma.done.wait [#allocation5], 128  }
 0x315   :  { %471 = vsyncadd [#allocation5], 4294967168 }
 0x316   :  { %314 = vsyncpa [#allocation4], 1 }
 0x317   :  { %315 = vsyncpa [#allocation7], 1 }
 0x318   :  { %316 = vsyncpa [#allocation5], 1 }

// kernel: tpu_custom_call.1
= control target key start
LH: loop header
LB: loop body
LE: loop exit
PB: predicated region body
PF: predicated region fallthrough
CT: control target
= control target key end

     0   :  { %12 = vsyncpa [#allocation4], 0  ;;  %s562_s0 = inlined_call_operand.hbm [shape: bf16[16,32], index: 0, kind: input, shape index: {}]   ;;  %s563_s1 = inlined_call_operand.hbm [shape: bf16[32,32], index: 1, kind: input, shape index: {}]   ;;  %s564_s2 = inlined_call_operand.vmem [shape: f32[1,32], index: 2, kind: input, shape index: {}]   ;;  %s565_s3 = inlined_call_operand.vmem [shape: f32[1,32], index: 3, kind: input, shape index: {}]   ;;  %s566_s4 = inlined_call_operand.vmem [shape: f32[1,32], index: 4, kind: input, shape index: {}]   ;;  %s567_s5 = inlined_call_operand.hbm [shape: bf16[32,128], index: 5, kind: input, shape index: {}]   ;;  %s568_s6 = inlined_call_operand.vmem [shape: f32[1,128], index: 6, kind: input, shape index: {}]   ;;  %s569_s7 = inlined_call_operand.hbm [shape: bf16[16,128], index: 7, kind: output, shape index: {}]  }
   0x1   :  { %13 = vsyncpa [#allocation7], 0 }
   0x2   :  { %14 = vsyncpa [#allocation5], 0  ;;  %s472_s24 = smov [#allocation6]   ;;  %s473_s26 = smov [#allocation3]  }
   0x3   :  { %s32_s25 = sshll.u32 %s472_s24, 4  ;;  %s20_s27 = sshll.u32 %s473_s26, 4  ;;  %s33_s25 = int_to_ptr.vmem [resolvable:$true] %s32_s25  ;;  %s21_s27 = int_to_ptr.vmem [resolvable:$true] %s20_s27 }
   0x4   :  { %s394_s28 = scalar_lea.vmem %s33_s25, 256  ;;  %p399_p1 = scmp.lt.s32.totalorder %s33_s25, %s33_s25 }
   0x5   :  { %p395_p0 = scmp.ne.s32.totalorder %s33_s25, %s394_s28  ;;  %p400_p2 = scmp.lt.s32.totalorder %s394_s28, %s394_s28 }
   0x7   :  { %p401_p3 = por %p400_p2, %p399_p1 }
   0x9   :  { %p402_p4 = pnand %p401_p3, %p395_p0 }
   0xb   :  { %405 = shalt.err (!%p402_p4)
}
   0xc   :  { %s474_s29 = smov 64   ;;  %s475_s30 = smov 4  }
   0xd   :  { %38 = dma.hbm_to_vmem [thread:$0]  %s563_s1, 256, %s33_s25, [#allocation7], %s474_s29, %s474_s29, %s475_s30  }
   0xe   :  { %s414_s10 = scalar_lea.vmem %s21_s27, 128  ;;  %p419_p6 = scmp.lt.s32.totalorder %s21_s27, %s21_s27 }
   0xf   :  { %p415_p5 = scmp.ne.s32.totalorder %s21_s27, %s414_s10  ;;  %p420_p7 = scmp.lt.s32.totalorder %s414_s10, %s414_s10 }
  0x11   :  { %p421_p8 = por %p420_p7, %p419_p6 }
  0x13   :  { %p422_p9 = pnand %p421_p8, %p415_p5 }
  0x15   :  { %425 = shalt.err (!%p422_p9)
}
  0x16   :  { %26 = dma.hbm_to_vmem [thread:$0]  %s562_s0, 128, %s21_s27, [#allocation4], %s474_s29, %s474_s29, %s475_s30  }
  0x17   :  { %s476_s13 = smov [#allocation8]  }
  0x18   :  { %s50_s14 = sshll.u32 %s476_s13, 4  ;;  %s51_s14 = int_to_ptr.vmem [resolvable:$true] %s50_s14 }
  0x19   :  { %s434_s15 = scalar_lea.vmem %s51_s14, 256  ;;  %p439_p11 = scmp.lt.s32.totalorder %s51_s14, %s51_s14 }
  0x1a   :  { %p435_p10 = scmp.ne.s32.totalorder %s51_s14, %s434_s15  ;;  %p440_p12 = scmp.lt.s32.totalorder %s434_s15, %s434_s15 }
  0x1c   :  { %p441_p13 = por %p440_p12, %p439_p11 }
  0x1e   :  { %p442_p0 = pnand %p441_p13, %p435_p10 }
  0x20   :  { %445 = shalt.err (!%p442_p0)
}
  0x21   :  { %56 = dma.hbm_to_vmem [thread:$0]  %s567_s5, 256, %s51_s14, [#allocation7], %s474_s29, %s474_s29, %s475_s30  }
  0x22   :  { %466 = dma.done.wait [#allocation4], 128  }
  0x23   :  { %467 = vsyncadd [#allocation4], 4294967168 }
  0x24   :  { %468 = dma.done.wait [#allocation7], 512  }
  0x25   :  { %469 = vsyncadd [#allocation7], 4294966784  ;;  %v477_v0 = vmov 0.0   ;;  %vm478_vm0 = vmmov 0   ;;  %v372_v1 = vld [vmem:[#allocation6 + $0x8] sm:$0xff]   ;;  %v373_v2 = vld [vmem:[#allocation6] sm:$0xff]  }
  0x26   :  { %348 = vmatprep.subr.bf16.mxu0 %v477_v0  ;;  %352 = vmatprep.mubr.msk.bf16.mxu0 %vm478_vm0, %v477_v0  ;;  %v374_v3 = vld [vmem:[#allocation3] sm:$0xff]   ;;  %vm103_vm1 = vcmask 261120   ;;  %v317_v4 = vld [vmem:[%s564_s2] ss:$0 sm:$0xff]  ;;  %vm211_vm2 = vcmask 257024  }
  0x27   :  { %356 = vmatprep.subr.bf16.mxu1 %v477_v0  ;;  %360 = vmatprep.mubr.msk.bf16.mxu1 %vm478_vm0, %v477_v0  ;;  %v375_v33 = vld [vmem:[#allocation8 + $0x8] sm:$0xff]   ;;  %v376_v34 = vld [vmem:[#allocation8] sm:$0xff]  }
  0x28   :  { %349 = vmatpush3.bf16.msra.mxu0 %v372_v1  ;;  %357 = vmatpush3.bf16.msra.mxu1 %v375_v33  ;;  %v322_v42 = vld [vmem:[%s565_s3] ss:$0 sm:$0xff] }
  0x29   :  { %350 = vmatprep.subr.bf16.mxu0 %v477_v0  ;;  %358 = vmatprep.subr.bf16.mxu1 %v477_v0  ;;  %v323_v44 = vld [vmem:[%s566_s4] ss:$0 sm:$0xff]  ;;  %s479_s4 = smov [#allocation9]  }
  0x2a   :  { %v326_v55 = vld [vmem:[%s568_s6] ss:$0 sm:$0xff]  ;;  %s304_s21 = sshll.u32 %s479_s4, 4  ;;  %s305_s21 = int_to_ptr.vmem [resolvable:$true] %s304_s21 }
  0x2b   :  { %s446_s22 = scalar_lea.vmem %s305_s21, 128  ;;  %p451_p2 = scmp.lt.s32.totalorder %s305_s21, %s305_s21 }
  0x2c   :  { %351 = vmatpush3.bf16.msra.mxu0 %v373_v2  ;;  %359 = vmatpush3.bf16.msra.mxu1 %v376_v34  ;;  %p447_p1 = scmp.ne.s32.totalorder %s305_s21, %s446_s22  ;;  %p452_p3 = scmp.lt.s32.totalorder %s446_s22, %s446_s22 }
  0x2e   :  { %p453_p4 = por %p452_p3, %p451_p2 }
  0x2f   :  { %353 = vmatmul.mubr.msk.bf16.vlgmr.msra.gmra.mxu0 %vm103_vm1, %v374_v3 }
  0x30   :  { %p454_p5 = pnand %p453_p4, %p447_p1 }
  0xef   :  { %v141_v5 = vpop.f32.mrf.mxu0 }
  0xf0   :  { %v142_v6 = vadd.f32 %v317_v4, %v141_v5 }
  0xf1   :  { %v354_v7 = vpop.f32.mrf.mxu0 }
  0xf2   :  { %v150_v8 = vmul.f32 0.70710677, %v142_v6  ;;  %v148_v14 = vmul.f32 0.5, %v142_v6 }
  0xf3   :  { %v144_v9 = vpop.f32.mrf.mxu0 }
  0xf4   :  { %378 = verf.f32 %v150_v8  ;;  %v145_v10 = vadd.f32 %v317_v4, %v144_v9 }
  0xf5   :  { %v355_v11 = vpop.f32.mrf.mxu0 }
  0xf6   :  { %v151_v12 = vmul.f32 0.70710677, %v145_v10  ;;  %v149_v18 = vmul.f32 0.5, %v145_v10 }
  0xf8   :  { %380 = verf.f32 %v151_v12 }
 0x101   :  { %v379_v13 = vpop.eup %378 }
 0x102   :  { %v154_v15 = vadd.f32 1.0, %v379_v13 }
 0x104   :  { %v156_v16 = vmul.f32 %v154_v15, %v148_v14 }
 0x105   :  { %v381_v17 = vpop.eup %380 }
 0x106   :  { %v158_v19 = vsel %vm103_vm1, %v156_v16, 0.0  ;;  %v155_v20 = vadd.f32 1.0, %v381_v17 }
 0x107   :  { %159 = vadd.xlane.f32.xlu0 %v158_v19 }
 0x108   :  { %v157_v21 = vmul.f32 %v155_v20, %v149_v18 }
 0x10a   :  { %v161_v22 = vsel %vm103_vm1, %v157_v21, 0.0 }
 0x10b   :  { %162 = vadd.xlane.f32.xlu0 %v161_v22 }
 0x190   :  { %v160_v23 = vpop.xlane.xlu0 %159 }
 0x191   :  { %v165_v24 = vmul.f32 0.03125, %v160_v23 }
 0x193   :  { %v167_v25 = vsub.f32 %v156_v16, %v165_v24 }
 0x194   :  { %v163_v26 = vpop.xlane.xlu0 %162 }
 0x195   :  { %v166_v27 = vmul.f32 0.03125, %v163_v26  ;;  %v169_v28 = vmul.f32 %v167_v25, %v167_v25 }
 0x197   :  { %v168_v29 = vsub.f32 %v157_v21, %v166_v27  ;;  %v171_v30 = vsel %vm103_vm1, %v169_v28, 0.0 }
 0x198   :  { %172 = vadd.xlane.f32.xlu1 %v171_v30 }
 0x199   :  { %v170_v31 = vmul.f32 %v168_v29, %v168_v29 }
 0x19b   :  { %v174_v32 = vsel %vm103_vm1, %v170_v31, 0.0 }
 0x19c   :  { %175 = vadd.xlane.f32.xlu1 %v174_v32 }
 0x221   :  { %v173_v35 = vpop.xlane.xlu1 %172 }
 0x222   :  { %v177_v36 = vmul.f32 0.03125, %v173_v35 }
 0x224   :  { %v179_v37 = vadd.f32 1e-12, %v177_v36 }
 0x225   :  { %v176_v38 = vpop.xlane.xlu1 %175 }
 0x226   :  { %382 = vrsqrt.f32 %v179_v37  ;;  %v178_v39 = vmul.f32 0.03125, %v176_v38 }
 0x228   :  { %v180_v40 = vadd.f32 1e-12, %v178_v39 }
 0x22a   :  { %384 = vrsqrt.f32 %v180_v40 }
 0x233   :  { %v383_v41 = vpop.eup %382 }
 0x234   :  { %v183_v43 = vmul.f32 %v383_v41, %v167_v25 }
 0x236   :  { %v192_v45 = vmul.f32 %v322_v42, %v183_v43 }
 0x237   :  { %v385_v46 = vpop.eup %384 }
 0x238   :  { %v201_v47 = vadd.f32 %v323_v44, %v192_v45  ;;  %v184_v48 = vmul.f32 %v385_v46, %v168_v29 }
 0x23a   :  { %v333_v49 = vpack.c.bf16 %v201_v47, %v201_v47  ;;  %v193_v50 = vmul.f32 %v322_v42, %v184_v48 }
 0x23c   :  { %212 = vst.msk [vmem:[#allocation2] sm:$0xf] %vm211_vm2, %v333_v49  ;;  %v202_v51 = vadd.f32 %v323_v44, %v193_v50 }
 0x23e   :  { %v334_v52 = vpack.c.bf16 %v202_v51, %v202_v51 }
 0x240   :  { %213 = vst.msk [vmem:[#allocation2 + $0x4] sm:$0xf] %vm211_vm2, %v334_v52 }
 0x247   :  { %v377_v53 = vld [vmem:[#allocation2] sm:$0xff]  }
 0x248   :  { %361 = vmatmul.mubr.msk.bf16.vlgmr.msra.gmra.mxu1 %vm103_vm1, %v377_v53 }
 0x308   :  { %v282_v54 = vpop.f32.mrf.mxu1 }
 0x309   :  { %v283_v58 = vadd.f32 %v326_v55, %v282_v54 }
 0x30a   :  { %v362_v56 = vpop.f32.mrf.mxu1 }
 0x30c   :  { %v285_v57 = vpop.f32.mrf.mxu1 }
 0x30d   :  { %v286_v59 = vadd.f32 %v326_v55, %v285_v57 }
 0x30e   :  { %v363_v60 = vpop.f32.mrf.mxu1 }
 0x30f   :  { %v340_v61 = vpack.c.bf16 %v286_v59, %v283_v58 }
 0x311   :  { %341 = vst [vmem:[#allocation9] sm:$0xff] %v340_v61  }
 0x312   :  { %457 = shalt.err (!%p454_p5)
}
 0x313   :  { %310 = dma.vmem_to_hbm [thread:$0]  %s305_s21, 128, %s569_s7, [#allocation5], %s474_s29, %s474_s29, %s475_s30  }
 0x314   :  { %470 = dma.done.wait [#allocation5], 128  }
 0x315   :  { %471 = vsyncadd [#allocation5], 4294967168 }
 0x316   :  { %314 = vsyncpa [#allocation4], 1 }
 0x317   :  { %315 = vsyncpa [#allocation7], 1 }
 0x318   :  { %316 = vsyncpa [#allocation5], 1 }

</bundles_post_ra>
